<compile_context>
chip_gen: v5e
topology: v5e:2x2
jax: 0.10.0
libtpu: 0.0.40
codegen_flags: <defaults>
</compile_context>

<pallas_src>
import math

import jax
import jax.numpy as jnp
from jax import lax
from jax.experimental import pallas as pl
from jax.experimental.pallas import tpu as pltpu

# ---------------- deterministic "config" (mirrors config.model / config.dataset) ----------
B = 2                      # batch size
N = 16                     # max number of nodes per graph
INPUT_DIM = 8              # embedding dim D
HIDDEN_DIM = [32, 32]      # config.model.hidden_dim
OUTPUT_DIM = 4             # P
NUM_LAYER = len(HIDDEN_DIM)
DIFFUSION_DIST = (1, 2, 3)             # config.model.diffusion_dist
NUM_SCALE = len(DIFFUSION_DIST)
MAX_DIST = max(DIFFUSION_DIST)
NUM_ATOM = 10                          # config.dataset.num_atom
NUM_EDGETYPE = 2                       # config.dataset.num_bond_type
DROPOUT = 0.0                          # TODO(synk): dropout is a no-op (p=0.0 / eval mode)

DIM_LIST = [INPUT_DIM] + HIDDEN_DIM + [OUTPUT_DIM]
E1 = NUM_EDGETYPE + 1                  # edge types incl. self (3)
NUM_PIECE = E1 + NUM_SCALE             # 6 feature blocks per layer
BN = B * N                             # nodes in the whole batch

# ---------------- parameter slab layout (8-row-aligned blocks, 32 lanes) -------------------
SLAB_COLS = max(HIDDEN_DIM + [OUTPUT_DIM + 1, INPUT_DIM])   # 32


def _round8(x):
    return ((x + 7) // 8) * 8


_OFF = {}
_r = 0
for _tt in range(NUM_LAYER):
    _OFF[f"w{_tt}"] = _r
    _r += _round8(NUM_PIECE * DIM_LIST[_tt])
    _OFF[f"b{_tt}"] = _r
    _r += 8
_OFF["w_head"] = _r
_r += _round8(DIM_LIST[-2])
_OFF["b_head"] = _r
_r += 8
_OFF["emb"] = _r
_r += _round8(NUM_ATOM)
SLAB_ROWS = _r                         # 312 rows x 32 lanes f32 ~= 39 KiB


# ---------------- fused Pallas kernel -------------------------------------------------------
def _fused_kernel(L_ref, ids_ref, slab_ref, o_ref):
    """Whole DCNN forward in one invocation.

    L_ref    : (NUM_PIECE*B*N, B*N)  block-diagonal stacked operators
               (piece order: edge types 0..E, then diffusion dists 1..)
    ids_ref  : (B*N, 1) int32        node atom ids
    slab_ref : (SLAB_ROWS, 32) f32   packed weights / biases / embedding table
    o_ref    : (B, P) f32            per-graph scores
    """
    # -- fused embedding gather: one-hot(ids) @ embedding_table -----------------------------
    ids = ids_ref[...]                                                        # (BN, 1)
    onehot = (ids == lax.broadcasted_iota(jnp.int32, (BN, NUM_ATOM), 1)
              ).astype(jnp.float32)                                           # (BN, 10)
    emb = slab_ref[_OFF["emb"]:_OFF["emb"] + NUM_ATOM, 0:INPUT_DIM]           # (10, D)
    state = jnp.dot(onehot, emb, preferred_element_type=jnp.float32)          # (BN, D)

    Lbd = L_ref[...]                                                          # (6*BN, BN)

    # -- propagation layers ------------------------------------------------------------------
    for tt in range(NUM_LAYER):
        d_in, h = DIM_LIST[tt], DIM_LIST[tt + 1]
        # all 6 pieces x both graphs in ONE MXU pass (diffusion powers pre-stacked)
        stacked = jnp.dot(Lbd, state, preferred_element_type=jnp.float32)     # (6*BN, d_in)
        w0 = _OFF[f"w{tt}"]
        # accumulate piece @ W-row-block instead of a lane-dim concatenate
        acc = jnp.dot(stacked[0:BN, :], slab_ref[w0:w0 + d_in, 0:h],
                      preferred_element_type=jnp.float32)
        for p in range(1, NUM_PIECE):
            acc = acc + jnp.dot(stacked[p * BN:(p + 1) * BN, :],
                                slab_ref[w0 + p * d_in:w0 + (p + 1) * d_in, 0:h],
                                preferred_element_type=jnp.float32)
        bias = slab_ref[_OFF[f"b{tt}"]:_OFF[f"b{tt}"] + 1, 0:h]               # (1, h)
        state = jnp.maximum(acc + bias, 0.0)                                  # ReLU
        # dropout(p=0.0) skipped

    # -- fused output + attention head (one lane-padded matmul) -----------------------------
    hw, hb = _OFF["w_head"], _OFF["b_head"]
    head = jnp.dot(state, slab_ref[hw:hw + DIM_LIST[-2], :],
                   preferred_element_type=jnp.float32) + slab_ref[hb:hb + 1, :]
    y = head[:, 0:OUTPUT_DIM]                                                 # (BN, P)
    att = jax.nn.sigmoid(head[:, OUTPUT_DIM:OUTPUT_DIM + 1])                  # (BN, 1) -> EUP
    weighted = att * y

    # -- per-graph mean pooling (mask=None path) ---------------------------------------------
    scores = [jnp.mean(weighted[b * N:(b + 1) * N, :], axis=0, keepdims=True)
              for b in range(B)]
    o_ref[...] = jnp.concatenate(scores, axis=0)                              # single store


# ---------------- wrapper helpers ------------------------------------------------------------
def _pack_slab(params):
    """Pack all weights/biases + embedding table into one (SLAB_ROWS, 32) f32 slab."""
    slab = jnp.zeros((SLAB_ROWS, SLAB_COLS), jnp.float32)
    for tt in range(NUM_LAYER):
        w, b = params["w"][tt], params["b"][tt]
        slab = slab.at[_OFF[f"w{tt}"]:_OFF[f"w{tt}"] + w.shape[0], 0:w.shape[1]].set(w)
        slab = slab.at[_OFF[f"b{tt}"]:_OFF[f"b{tt}"] + 1, 0:b.shape[1]].set(b)
    w_head = jnp.concatenate([params["w_out"], params["w_att"]], axis=1)      # (32, P+1)
    b_head = jnp.concatenate([params["b_out"], params["b_att"]], axis=1)      # (1, P+1)
    slab = slab.at[_OFF["w_head"]:_OFF["w_head"] + w_head.shape[0],
                   0:w_head.shape[1]].set(w_head)
    slab = slab.at[_OFF["b_head"]:_OFF["b_head"] + 1, 0:b_head.shape[1]].set(b_head)
    slab = slab.at[_OFF["emb"]:_OFF["emb"] + NUM_ATOM, 0:INPUT_DIM].set(params["embedding"])
    return slab


def _stack_operators(L):
    """(B, N, N, E+1) -> block-diagonal (NUM_PIECE*B*N, B*N) stacked operator.

    Piece order matches torch.cat(msg + state_scale): edge 0..E, then L0^d for d
    in DIFFUSION_DIST. Diffusion powers are precomputed here (cheap XLA op) so
    the kernel has no serial tiny-matmul chain.
    """
    L_e = jnp.transpose(L, (0, 3, 1, 2))                                      # (B, E1, N, N)
    L0 = L_e[:, 0]
    powers = {1: L0}
    p = L0
    for d in range(2, MAX_DIST + 1):
        p = jnp.matmul(p, L0, precision=lax.Precision.HIGHEST)
        powers[d] = p
    ops = jnp.stack([L_e[:, e] for e in range(E1)]
                    + [powers[d] for d in DIFFUSION_DIST], axis=1)            # (B, 6, N, N)
    eye_b = jnp.eye(B, dtype=L.dtype)
    bd = jnp.einsum("bpij,bc->pbicj", ops, eye_b)                             # (6, B, N, B, N)
    return bd.reshape(NUM_PIECE * B * N, B * N)


def _cost_estimate():
    flops = 2 * BN * NUM_ATOM * INPUT_DIM                    # one-hot embedding matmul
    for tt in range(NUM_LAYER):
        d_in, h = DIM_LIST[tt], DIM_LIST[tt + 1]
        flops += 2 * (NUM_PIECE * BN) * BN * d_in            # stacked block-diag messages
        flops += 2 * BN * d_in * h * NUM_PIECE               # filter row-block matmuls
    flops += 2 * BN * DIM_LIST[-2] * SLAB_COLS               # fused output+attention head
    bytes_accessed = 4 * (NUM_PIECE * BN * BN + BN
                          + SLAB_ROWS * SLAB_COLS + B * OUTPUT_DIM)
    return pl.CostEstimate(flops=int(flops), transcendentals=int(BN),
                           bytes_accessed=int(bytes_accessed))


def dcnn_forward(node_feat, L, params):
    # node_feat: (B, N) int32 ; L: (B, N, N, E+1) float32
    L_bd = _stack_operators(L)                               # (6*B*N, B*N)
    ids = node_feat.reshape(BN, 1).astype(jnp.int32)         # (B*N, 1)
    slab = _pack_slab(params)                                # (SLAB_ROWS, 32)

    vmem = pl.BlockSpec(memory_space=pltpu.MemorySpace.VMEM)  # whole-array VMEM resident
    return pl.pallas_call(
        _fused_kernel,
        out_shape=jax.ShapeDtypeStruct((B, OUTPUT_DIM), jnp.float32),
        in_specs=[vmem, vmem, vmem],
        out_specs=vmem,
        cost_estimate=_cost_estimate(),
    )(L_bd, ids, slab)


# ---------------- parameter init (deterministic, mirrors _init_param) -----------------------
def xavier_uniform(key, fan_in, fan_out):
    a = math.sqrt(6.0 / (fan_in + fan_out))
    # stored as (in, out) == torch weight (out, in) transposed
    return jax.random.uniform(key, (fan_in, fan_out), jnp.float32, -a, a)


def init_params(key):
    keys = jax.random.split(key, NUM_LAYER + 3)
    params = {"w": [], "b": []}
    mult = NUM_SCALE + NUM_EDGETYPE + 1
    for tt in range(NUM_LAYER):
        fin = DIM_LIST[tt] * mult
        fout = DIM_LIST[tt + 1]
        params["w"].append(xavier_uniform(keys[tt], fin, fout))
        params["b"].append(jnp.zeros((1, fout), jnp.float32))
    # filter[-1]
    params["w_out"] = xavier_uniform(keys[NUM_LAYER], DIM_LIST[-2], DIM_LIST[-1])
    params["b_out"] = jnp.zeros((1, DIM_LIST[-1]), jnp.float32)
    # att_func = Linear(H, 1) + Sigmoid
    params["w_att"] = xavier_uniform(keys[NUM_LAYER + 1], DIM_LIST[-2], 1)
    params["b_att"] = jnp.zeros((1, 1), jnp.float32)
    # nn.Embedding default init: N(0, 1)
    params["embedding"] = jax.random.normal(
        keys[NUM_LAYER + 2], (NUM_ATOM, INPUT_DIM), jnp.float32)
    return params


# ---------------- pure-JAX reference (mirrors the torch forward) ------------------------------
def dcnn_forward_ref(node_feat, L, params):
    state = params["embedding"][node_feat]
    for tt in range(NUM_LAYER):
        msgs = [jnp.einsum("bij,bjd->bid", L[:, :, :, e], state)
                for e in range(NUM_EDGETYPE + 1)]
        scales = []
        tmp = state
        for dist in range(1, MAX_DIST + 1):
            tmp = jnp.einsum("bij,bjd->bid", L[:, :, :, 0], tmp)
            if dist in DIFFUSION_DIST:
                scales.append(tmp)
        feat = jnp.concatenate(msgs + scales, axis=2)
        state = jax.nn.relu(feat @ params["w"][tt] + params["b"][tt])
    y = state @ params["w_out"] + params["b_out"]
    att = jax.nn.sigmoid(state @ params["w_att"] + params["b_att"])
    return jnp.mean(att * y, axis=1)


# ---------------- main -------------------------------------------------------------------------
if __name__ == "__main__":
    key = jax.random.PRNGKey(0)
    k_param, k_feat, k_L = jax.random.split(key, 3)

    params = init_params(k_param)
    node_feat = jax.random.randint(k_feat, (B, N), 0, NUM_ATOM, dtype=jnp.int32)
    # random graph operator, row-normalized-ish so diffusion stays bounded
    L_raw = jax.random.uniform(k_L, (B, N, N, E1), jnp.float32)
    L = L_raw / jnp.sum(L_raw, axis=2, keepdims=True)

    fwd = jax.jit(dcnn_forward)
    score = jax.block_until_ready(fwd(node_feat, L, params))
    score_ref = jax.block_until_ready(dcnn_forward_ref(node_feat, L, params))

    assert score.shape == (B, OUTPUT_DIM)
    # TPU f32 matmuls may take bf16 MXU passes; 1e-3 still catches any structural bug.
    assert jnp.allclose(score, score_ref, atol=1e-3, rtol=1e-3), (score, score_ref)

    print("KERNEL_OK")
</pallas_src>

<mosaic_0001>
module attributes {stable_mosaic.version = 11 : i64} {
  func.func @_fused_kernel(%arg0: memref<192x32xf32, #tpu.memory_space<vmem>>, %arg1: memref<32x1xi32, #tpu.memory_space<vmem>>, %arg2: memref<312x32xf32, #tpu.memory_space<vmem>>, %arg3: memref<2x4xf32, #tpu.memory_space<vmem>>) attributes {dimension_semantics = [], scalar_prefetch = 0 : i64, scratch_operands = 0 : i64, tpu.core_type = #tpu.core_type<tc>} {
    %c0 = arith.constant 0 : index
    %c0_0 = arith.constant 0 : index
    %0 = vector.load %arg1[%c0, %c0_0] : memref<32x1xi32, #tpu.memory_space<vmem>>, vector<32x1xi32>
    %1 = tpu.iota {dimensions = array<i32: 1>} : vector<32x10xi32>
    %2 = vector.broadcast %0 : vector<32x1xi32> to vector<32x10xi32>
    %3 = arith.cmpi eq, %2, %1 : vector<32x10xi32>
    %4 = arith.extui %3 : vector<32x10xi1> to vector<32x10xi32>
    %5 = arith.sitofp %4 : vector<32x10xi32> to vector<32x10xf32>
    %c296 = arith.constant 296 : index
    %c0_1 = arith.constant 0 : index
    %6 = vector.load %arg2[%c296, %c0_1] : memref<312x32xf32, #tpu.memory_space<vmem>>, vector<10x8xf32>
    %cst = arith.constant dense<0.000000e+00> : vector<32x8xf32>
    %7 = tpu.matmul %5, %6, %cst {dimension_numbers = #tpu.dot_dimension_numbers<[1], [0], [0], [1], [0, 0, 1, 1], [], []>} : vector<32x10xf32>, vector<10x8xf32>, vector<32x8xf32> -> vector<32x8xf32>
    %c0_2 = arith.constant 0 : index
    %c0_3 = arith.constant 0 : index
    %8 = vector.load %arg0[%c0_2, %c0_3] : memref<192x32xf32, #tpu.memory_space<vmem>>, vector<192x32xf32>
    %cst_4 = arith.constant dense<0.000000e+00> : vector<192x8xf32>
    %9 = tpu.matmul %8, %7, %cst_4 {dimension_numbers = #tpu.dot_dimension_numbers<[1], [0], [0], [1], [0, 0, 1, 1], [], []>} : vector<192x32xf32>, vector<32x8xf32>, vector<192x8xf32> -> vector<192x8xf32>
    %10 = vector.extract_strided_slice %9 {offsets = [0, 0], sizes = [32, 8], strides = [1, 1]} : vector<192x8xf32> to vector<32x8xf32>
    %c0_5 = arith.constant 0 : index
    %c0_6 = arith.constant 0 : index
    %11 = vector.load %arg2[%c0_5, %c0_6] : memref<312x32xf32, #tpu.memory_space<vmem>>, vector<8x32xf32>
    %cst_7 = arith.constant dense<0.000000e+00> : vector<32x32xf32>
    %12 = tpu.matmul %10, %11, %cst_7 {dimension_numbers = #tpu.dot_dimension_numbers<[1], [0], [0], [1], [0, 0, 1, 1], [], []>} : vector<32x8xf32>, vector<8x32xf32>, vector<32x32xf32> -> vector<32x32xf32>
    %13 = vector.extract_strided_slice %9 {offsets = [32, 0], sizes = [32, 8], strides = [1, 1]} : vector<192x8xf32> to vector<32x8xf32>
    %c8 = arith.constant 8 : index
    %c0_8 = arith.constant 0 : index
    %14 = vector.load %arg2[%c8, %c0_8] : memref<312x32xf32, #tpu.memory_space<vmem>>, vector<8x32xf32>
    %cst_9 = arith.constant dense<0.000000e+00> : vector<32x32xf32>
    %15 = tpu.matmul %13, %14, %cst_9 {dimension_numbers = #tpu.dot_dimension_numbers<[1], [0], [0], [1], [0, 0, 1, 1], [], []>} : vector<32x8xf32>, vector<8x32xf32>, vector<32x32xf32> -> vector<32x32xf32>
    %16 = arith.addf %12, %15 : vector<32x32xf32>
    %17 = vector.extract_strided_slice %9 {offsets = [64, 0], sizes = [32, 8], strides = [1, 1]} : vector<192x8xf32> to vector<32x8xf32>
    %c16 = arith.constant 16 : index
    %c0_10 = arith.constant 0 : index
    %18 = vector.load %arg2[%c16, %c0_10] : memref<312x32xf32, #tpu.memory_space<vmem>>, vector<8x32xf32>
    %cst_11 = arith.constant dense<0.000000e+00> : vector<32x32xf32>
    %19 = tpu.matmul %17, %18, %cst_11 {dimension_numbers = #tpu.dot_dimension_numbers<[1], [0], [0], [1], [0, 0, 1, 1], [], []>} : vector<32x8xf32>, vector<8x32xf32>, vector<32x32xf32> -> vector<32x32xf32>
    %20 = arith.addf %16, %19 : vector<32x32xf32>
    %21 = vector.extract_strided_slice %9 {offsets = [96, 0], sizes = [32, 8], strides = [1, 1]} : vector<192x8xf32> to vector<32x8xf32>
    %c24 = arith.constant 24 : index
    %c0_12 = arith.constant 0 : index
    %22 = vector.load %arg2[%c24, %c0_12] : memref<312x32xf32, #tpu.memory_space<vmem>>, vector<8x32xf32>
    %cst_13 = arith.constant dense<0.000000e+00> : vector<32x32xf32>
    %23 = tpu.matmul %21, %22, %cst_13 {dimension_numbers = #tpu.dot_dimension_numbers<[1], [0], [0], [1], [0, 0, 1, 1], [], []>} : vector<32x8xf32>, vector<8x32xf32>, vector<32x32xf32> -> vector<32x32xf32>
    %24 = arith.addf %20, %23 : vector<32x32xf32>
    %25 = vector.extract_strided_slice %9 {offsets = [128, 0], sizes = [32, 8], strides = [1, 1]} : vector<192x8xf32> to vector<32x8xf32>
    %c32 = arith.constant 32 : index
    %c0_14 = arith.constant 0 : index
    %26 = vector.load %arg2[%c32, %c0_14] : memref<312x32xf32, #tpu.memory_space<vmem>>, vector<8x32xf32>
    %cst_15 = arith.constant dense<0.000000e+00> : vector<32x32xf32>
    %27 = tpu.matmul %25, %26, %cst_15 {dimension_numbers = #tpu.dot_dimension_numbers<[1], [0], [0], [1], [0, 0, 1, 1], [], []>} : vector<32x8xf32>, vector<8x32xf32>, vector<32x32xf32> -> vector<32x32xf32>
    %28 = arith.addf %24, %27 : vector<32x32xf32>
    %29 = vector.extract_strided_slice %9 {offsets = [160, 0], sizes = [32, 8], strides = [1, 1]} : vector<192x8xf32> to vector<32x8xf32>
    %c40 = arith.constant 40 : index
    %c0_16 = arith.constant 0 : index
    %30 = vector.load %arg2[%c40, %c0_16] : memref<312x32xf32, #tpu.memory_space<vmem>>, vector<8x32xf32>
    %cst_17 = arith.constant dense<0.000000e+00> : vector<32x32xf32>
    %31 = tpu.matmul %29, %30, %cst_17 {dimension_numbers = #tpu.dot_dimension_numbers<[1], [0], [0], [1], [0, 0, 1, 1], [], []>} : vector<32x8xf32>, vector<8x32xf32>, vector<32x32xf32> -> vector<32x32xf32>
    %32 = arith.addf %28, %31 : vector<32x32xf32>
    %c48 = arith.constant 48 : index
    %c0_18 = arith.constant 0 : index
    %33 = vector.load %arg2[%c48, %c0_18] : memref<312x32xf32, #tpu.memory_space<vmem>>, vector<1x32xf32>
    %34 = vector.broadcast %33 : vector<1x32xf32> to vector<32x32xf32>
    %35 = arith.addf %32, %34 : vector<32x32xf32>
    %cst_19 = arith.constant 0.000000e+00 : f32
    %36 = vector.broadcast %cst_19 : f32 to vector<32x32xf32>
    %37 = arith.maximumf %35, %36 : vector<32x32xf32>
    %cst_20 = arith.constant dense<0.000000e+00> : vector<192x32xf32>
    %38 = tpu.matmul %8, %37, %cst_20 {dimension_numbers = #tpu.dot_dimension_numbers<[1], [0], [0], [1], [0, 0, 1, 1], [], []>} : vector<192x32xf32>, vector<32x32xf32>, vector<192x32xf32> -> vector<192x32xf32>
    %39 = vector.extract_strided_slice %38 {offsets = [0, 0], sizes = [32, 32], strides = [1, 1]} : vector<192x32xf32> to vector<32x32xf32>
    %c56 = arith.constant 56 : index
    %c0_21 = arith.constant 0 : index
    %40 = vector.load %arg2[%c56, %c0_21] : memref<312x32xf32, #tpu.memory_space<vmem>>, vector<32x32xf32>
    %cst_22 = arith.constant dense<0.000000e+00> : vector<32x32xf32>
    %41 = tpu.matmul %39, %40, %cst_22 {dimension_numbers = #tpu.dot_dimension_numbers<[1], [0], [0], [1], [0, 0, 1, 1], [], []>} : vector<32x32xf32>, vector<32x32xf32>, vector<32x32xf32> -> vector<32x32xf32>
    %42 = vector.extract_strided_slice %38 {offsets = [32, 0], sizes = [32, 32], strides = [1, 1]} : vector<192x32xf32> to vector<32x32xf32>
    %c88 = arith.constant 88 : index
    %c0_23 = arith.constant 0 : index
    %43 = vector.load %arg2[%c88, %c0_23] : memref<312x32xf32, #tpu.memory_space<vmem>>, vector<32x32xf32>
    %cst_24 = arith.constant dense<0.000000e+00> : vector<32x32xf32>
    %44 = tpu.matmul %42, %43, %cst_24 {dimension_numbers = #tpu.dot_dimension_numbers<[1], [0], [0], [1], [0, 0, 1, 1], [], []>} : vector<32x32xf32>, vector<32x32xf32>, vector<32x32xf32> -> vector<32x32xf32>
    %45 = arith.addf %41, %44 : vector<32x32xf32>
    %46 = vector.extract_strided_slice %38 {offsets = [64, 0], sizes = [32, 32], strides = [1, 1]} : vector<192x32xf32> to vector<32x32xf32>
    %c120 = arith.constant 120 : index
    %c0_25 = arith.constant 0 : index
    %47 = vector.load %arg2[%c120, %c0_25] : memref<312x32xf32, #tpu.memory_space<vmem>>, vector<32x32xf32>
    %cst_26 = arith.constant dense<0.000000e+00> : vector<32x32xf32>
    %48 = tpu.matmul %46, %47, %cst_26 {dimension_numbers = #tpu.dot_dimension_numbers<[1], [0], [0], [1], [0, 0, 1, 1], [], []>} : vector<32x32xf32>, vector<32x32xf32>, vector<32x32xf32> -> vector<32x32xf32>
    %49 = arith.addf %45, %48 : vector<32x32xf32>
    %50 = vector.extract_strided_slice %38 {offsets = [96, 0], sizes = [32, 32], strides = [1, 1]} : vector<192x32xf32> to vector<32x32xf32>
    %c152 = arith.constant 152 : index
    %c0_27 = arith.constant 0 : index
    %51 = vector.load %arg2[%c152, %c0_27] : memref<312x32xf32, #tpu.memory_space<vmem>>, vector<32x32xf32>
    %cst_28 = arith.constant dense<0.000000e+00> : vector<32x32xf32>
    %52 = tpu.matmul %50, %51, %cst_28 {dimension_numbers = #tpu.dot_dimension_numbers<[1], [0], [0], [1], [0, 0, 1, 1], [], []>} : vector<32x32xf32>, vector<32x32xf32>, vector<32x32xf32> -> vector<32x32xf32>
    %53 = arith.addf %49, %52 : vector<32x32xf32>
    %54 = vector.extract_strided_slice %38 {offsets = [128, 0], sizes = [32, 32], strides = [1, 1]} : vector<192x32xf32> to vector<32x32xf32>
    %c184 = arith.constant 184 : index
    %c0_29 = arith.constant 0 : index
    %55 = vector.load %arg2[%c184, %c0_29] : memref<312x32xf32, #tpu.memory_space<vmem>>, vector<32x32xf32>
    %cst_30 = arith.constant dense<0.000000e+00> : vector<32x32xf32>
    %56 = tpu.matmul %54, %55, %cst_30 {dimension_numbers = #tpu.dot_dimension_numbers<[1], [0], [0], [1], [0, 0, 1, 1], [], []>} : vector<32x32xf32>, vector<32x32xf32>, vector<32x32xf32> -> vector<32x32xf32>
    %57 = arith.addf %53, %56 : vector<32x32xf32>
    %58 = vector.extract_strided_slice %38 {offsets = [160, 0], sizes = [32, 32], strides = [1, 1]} : vector<192x32xf32> to vector<32x32xf32>
    %c216 = arith.constant 216 : index
    %c0_31 = arith.constant 0 : index
    %59 = vector.load %arg2[%c216, %c0_31] : memref<312x32xf32, #tpu.memory_space<vmem>>, vector<32x32xf32>
    %cst_32 = arith.constant dense<0.000000e+00> : vector<32x32xf32>
    %60 = tpu.matmul %58, %59, %cst_32 {dimension_numbers = #tpu.dot_dimension_numbers<[1], [0], [0], [1], [0, 0, 1, 1], [], []>} : vector<32x32xf32>, vector<32x32xf32>, vector<32x32xf32> -> vector<32x32xf32>
    %61 = arith.addf %57, %60 : vector<32x32xf32>
    %c248 = arith.constant 248 : index
    %c0_33 = arith.constant 0 : index
    %62 = vector.load %arg2[%c248, %c0_33] : memref<312x32xf32, #tpu.memory_space<vmem>>, vector<1x32xf32>
    %63 = vector.broadcast %62 : vector<1x32xf32> to vector<32x32xf32>
    %64 = arith.addf %61, %63 : vector<32x32xf32>
    %cst_34 = arith.constant 0.000000e+00 : f32
    %65 = vector.broadcast %cst_34 : f32 to vector<32x32xf32>
    %66 = arith.maximumf %64, %65 : vector<32x32xf32>
    %c256 = arith.constant 256 : index
    %c0_35 = arith.constant 0 : index
    %67 = vector.load %arg2[%c256, %c0_35] : memref<312x32xf32, #tpu.memory_space<vmem>>, vector<32x32xf32>
    %cst_36 = arith.constant dense<0.000000e+00> : vector<32x32xf32>
    %68 = tpu.matmul %66, %67, %cst_36 {dimension_numbers = #tpu.dot_dimension_numbers<[1], [0], [0], [1], [0, 0, 1, 1], [], []>} : vector<32x32xf32>, vector<32x32xf32>, vector<32x32xf32> -> vector<32x32xf32>
    %c288 = arith.constant 288 : index
    %c0_37 = arith.constant 0 : index
    %69 = vector.load %arg2[%c288, %c0_37] : memref<312x32xf32, #tpu.memory_space<vmem>>, vector<1x32xf32>
    %70 = vector.broadcast %69 : vector<1x32xf32> to vector<32x32xf32>
    %71 = arith.addf %68, %70 : vector<32x32xf32>
    %72 = vector.extract_strided_slice %71 {offsets = [0, 0], sizes = [32, 4], strides = [1, 1]} : vector<32x32xf32> to vector<32x4xf32>
    %73 = vector.extract_strided_slice %71 {offsets = [0, 4], sizes = [32, 1], strides = [1, 1]} : vector<32x32xf32> to vector<32x1xf32>
    %74 = arith.negf %73 : vector<32x1xf32>
    %75 = math.exp %74 : vector<32x1xf32>
    %cst_38 = arith.constant 1.000000e+00 : f32
    %76 = vector.broadcast %cst_38 : f32 to vector<32x1xf32>
    %77 = arith.addf %76, %75 : vector<32x1xf32>
    %78 = arith.divf %76, %77 : vector<32x1xf32>
    %79 = vector.broadcast %78 : vector<32x1xf32> to vector<32x4xf32>
    %80 = arith.mulf %79, %72 : vector<32x4xf32>
    %81 = vector.extract_strided_slice %80 {offsets = [0, 0], sizes = [16, 4], strides = [1, 1]} : vector<32x4xf32> to vector<16x4xf32>
    %cst_39 = arith.constant dense<0.000000e+00> : vector<4xf32>
    %82 = vector.multi_reduction <add>, %81, %cst_39 [0] : vector<16x4xf32> to vector<4xf32>
    %83 = vector.shape_cast %82 : vector<4xf32> to vector<1x4xf32>
    %cst_40 = arith.constant 1.600000e+01 : f32
    %84 = vector.broadcast %cst_40 : f32 to vector<1x4xf32>
    %85 = arith.divf %83, %84 : vector<1x4xf32>
    %86 = vector.extract_strided_slice %80 {offsets = [16, 0], sizes = [16, 4], strides = [1, 1]} : vector<32x4xf32> to vector<16x4xf32>
    %cst_41 = arith.constant dense<0.000000e+00> : vector<4xf32>
    %87 = vector.multi_reduction <add>, %86, %cst_41 [0] : vector<16x4xf32> to vector<4xf32>
    %88 = vector.shape_cast %87 : vector<4xf32> to vector<1x4xf32>
    %cst_42 = arith.constant 1.600000e+01 : f32
    %89 = vector.broadcast %cst_42 : f32 to vector<1x4xf32>
    %90 = arith.divf %88, %89 : vector<1x4xf32>
    %91 = tpu.concatenate %85, %90 in 0 : vector<1x4xf32>, vector<1x4xf32> -> vector<2x4xf32>
    %c0_43 = arith.constant 0 : index
    %c0_44 = arith.constant 0 : index
    %92 = vector.load %arg3[%c0_43, %c0_44] : memref<2x4xf32, #tpu.memory_space<vmem>>, vector<2x4xf32>
    tpu.vector_store %arg3[%c0_43, %c0_44], %91 {strides = array<i32>} : memref<2x4xf32, #tpu.memory_space<vmem>>, vector<2x4xf32>,
    return
  }
}

</mosaic_0001>

<bundles_post_ra>
// kernel: dcnn_forward.1
= control target key start
LH: loop header
LB: loop body
LE: loop exit
PB: predicated region body
PF: predicated region fallthrough
CT: control target
= control target key end

     0   :  { %vm60_vm0 = vcmask 1041408   ;;  %v1310_v2 = vmov 0   ;;  %s1759_s0 = inlined_call_operand.vmem [shape: f32[192,32], index: 0, kind: input, shape index: {}]   ;;  %s1760_s1 = inlined_call_operand.vmem [shape: s32[32,1], index: 1, kind: input, shape index: {}]   ;;  %s1761_s2 = inlined_call_operand.vmem [shape: f32[312,32], index: 2, kind: input, shape index: {}]   ;;  %s1762_s3 = inlined_call_operand.hbm [shape: f32[2,4], index: 3, kind: output, shape index: {}]  }
   0x1   :  { %v15_v0 = vld [vmem:[%s1760_s1] sm:$0xff]  ;;  %v17_v1 = vld [vmem:[%s1760_s1 + $0x10] sm:$0xff]  ;;  %1258 = vset.pattern.permute.xlu0 %v1310_v2  ;;  %1259 = vset.pattern.permute.xlu1 %v1310_v2 }
   0x2   :  { %v46_v3 = vld [vmem:[%s1761_s2 + $0x130] sm:$0x3]  ;;  %22 = vperm.xlu0 %1258, %v15_v0   ;;  %28 = vperm.xlu1 %1259, %v17_v1  }
   0x3   :  { %1142 = vmatpush.msk.msra.mxu0 %vm60_vm0, %v46_v3 }
   0x4   :  { %8 = vsyncpa [#allocation3], 0  ;;  %v16_v4 = vld [vmem:[%s1760_s1 + $0x8] sm:$0xff]  ;;  %v18_v5 = vld [vmem:[%s1760_s1 + $0x18] sm:$0xff]  ;;  %v19_v7 = vlaneseq  ;;  %vm47_vm1 = vcmask 80896   ;;  %v1311_v10 = vmov 0.0  }
   0x5   :  { %v45_v6 = vld [vmem:[%s1761_s2 + $0x128] sm:$0xff]  ;;  %v1360_v22 = vld [vmem:[%s1759_s0] sm:$0xff]  ;;  %vm117_vm6 = vcmask 261120   ;;  %v1374_v24 = vld [vmem:[%s1759_s0 + $0x10] sm:$0xff]  ;;  %vm281_vm7 = vcmask 64512   ;;  %s1129_s6 = sshll.u32 %s1762_s3, 4  ;;  %s1130_s6 = int_to_ptr.hbm [resolvable:$true] %s1129_s6 }
   0x6   :  { %79 = vmatpush.msra.mxu0 %v45_v6  ;;  %v20_v8 = vand.u32 127, %v19_v7  ;;  %v1367_v23 = vld [vmem:[%s1759_s0 + $0x8] sm:$0xff]  ;;  %v1381_v25 = vld [vmem:[%s1759_s0 + $0x18] sm:$0xff]  ;;  %v1388_v26 = vld [vmem:[%s1759_s0 + $0x20] sm:$0xff] }
   0x7   :  { %v1395_v27 = vld [vmem:[%s1759_s0 + $0x28] sm:$0xff]  ;;  %v1402_v28 = vld [vmem:[%s1759_s0 + $0x30] sm:$0xff]  ;;  %v1409_v29 = vld [vmem:[%s1759_s0 + $0x38] sm:$0xff] }
   0x8   :  { %v1416_v30 = vld [vmem:[%s1759_s0 + $0x40] sm:$0xff]  ;;  %v1423_v31 = vld [vmem:[%s1759_s0 + $0x48] sm:$0xff]  ;;  %v1430_v32 = vld [vmem:[%s1759_s0 + $0x50] sm:$0xff] }
   0x9   :  { %v1437_v33 = vld [vmem:[%s1759_s0 + $0x58] sm:$0xff]  ;;  %v1444_v34 = vld [vmem:[%s1759_s0 + $0x60] sm:$0xff]  ;;  %v1451_v35 = vld [vmem:[%s1759_s0 + $0x68] sm:$0xff] }
   0xa   :  { %25 = vperm.xlu0 %1258, %v16_v4   ;;  %31 = vperm.xlu1 %1259, %v18_v5   ;;  %v1458_v36 = vld [vmem:[%s1759_s0 + $0x70] sm:$0xff]  ;;  %v410_v37 = vld [vmem:[%s1761_s2 + $0x18] sm:$0xff]  ;;  %v280_v39 = vld [vmem:[%s1761_s2 + $0x8] sm:$0xff] }
   0xb   :  { %1252 = vmatpush.msra.mxu3 %v410_v37  ;;  %v1468_v38 = vld [vmem:[%s1759_s0 + $0x78] sm:$0xff]  ;;  %v1478_v41 = vld [vmem:[%s1759_s0 + $0x80] sm:$0xff]  ;;  %309 = vmatpush.msrb.mxu0 %v280_v39  ;;  %v1485_v43 = vld [vmem:[%s1759_s0 + $0x88] sm:$0xff] }
   0xc   :  { %1251 = vmatpush.msra.mxu2 %v280_v39  ;;  %v1492_v45 = vld [vmem:[%s1759_s0 + $0x90] sm:$0xff]  ;;  %v1499_v47 = vld [vmem:[%s1759_s0 + $0x98] sm:$0xff]  ;;  %v279_v48 = vld [vmem:[%s1761_s2] sm:$0xff] }
   0xd   :  { %v1509_v50 = vld [vmem:[%s1759_s0 + $0xa0] sm:$0xff]  ;;  %v1517_v52 = vld [vmem:[%s1759_s0 + $0xa8] sm:$0xff]  ;;  %v1525_v54 = vld [vmem:[%s1759_s0 + $0xb0] sm:$0xff] }
   0xe   :  { %350 = vmatpush.msrb.mxu2 %v279_v48  ;;  %v1533_v56 = vld [vmem:[%s1759_s0 + $0xb8] sm:$0xff]  ;;  %v364_v57 = vld [vmem:[%s1761_s2 + $0x10] sm:$0xff]  ;;  %v456_v62 = vld [vmem:[%s1761_s2 + $0x20] sm:$0xff] }
   0xf   :  { %v502_v2 = vld [vmem:[%s1761_s2 + $0x28] sm:$0xff] }
  0x74   :  { %v23_v9 = vpop.permute.xlu0 %22  ;;  %v29_v13 = vpop.permute.xlu1 %28 }
  0x75   :  { %vm33_vm2 = vcmp.eq.s32.totalorder %v23_v9, %v20_v8  ;;  %vm35_vm4 = vcmp.eq.s32.totalorder %v29_v13, %v20_v8 }
  0x76   :  { %v1138_v11 = vsel %vm33_vm2, 1.0, %v1311_v10  ;;  %v1140_v15 = vsel %vm35_vm4, 1.0, %v1311_v10 }
  0x77   :  { %1143 = vmatmul.msk.f32.vlgmr.msra.gmra.mxu0 %vm47_vm1, %v1138_v11 }
  0x78   :  { %484 = vmatpush.msra.mxu0 %v456_v62 }
  0x7c   :  { %v26_v12 = vpop.permute.xlu0 %25  ;;  %v32_v16 = vpop.permute.xlu1 %31 }
  0x7d   :  { %vm34_vm3 = vcmp.eq.s32.totalorder %v26_v12, %v20_v8  ;;  %vm36_vm5 = vcmp.eq.s32.totalorder %v32_v16, %v20_v8 }
  0x7e   :  { %v1139_v14 = vsel %vm34_vm3, 1.0, %v1311_v10  ;;  %v1141_v17 = vsel %vm36_vm5, 1.0, %v1311_v10 }
  0x7f   :  { %1144 = vmatmul.msk.f32.gmra.mxu0 %vm47_vm1, %v1139_v14 }
  0x87   :  { %1145 = vmatmul.msk.f32.gmra.mxu0 %vm47_vm1, %v1140_v15 }
  0x8f   :  { %1146 = vmatmul.msk.f32.gmra.mxu0 %vm47_vm1, %v1141_v17 }
  0xf4   :  { %v81_v18 = vpop.f32.mrf.mxu0 }
  0xfc   :  { %v84_v19 = vpop.f32.mrf.mxu0 }
 0x104   :  { %v87_v20 = vpop.f32.mrf.mxu0 }
 0x10c   :  { %v90_v21 = vpop.f32.mrf.mxu0 }
 0x10d   :  { %202 = vmatpush.msra.mxu1 %v90_v21 }
 0x10f   :  { %203 = vmatpush.msra.mxu1 %v87_v20 }
 0x111   :  { %204 = vmatpush.msra.mxu1 %v84_v19 }
 0x113   :  { %205 = vmatpush.msra.mxu1 %v81_v18 }
 0x114   :  { %1147 = vmatmul.msk.f32.vlgmr.msra.gmra.mxu1 %vm117_vm6, %v1360_v22 }
 0x115   :  { %438 = vmatpush.msrb.mxu1 %v410_v37 }
 0x11c   :  { %1148 = vmatmul.msk.f32.gmra.mxu1 %vm117_vm6, %v1367_v23 }
 0x124   :  { %1149 = vmatmul.msk.f32.gmra.mxu1 %vm117_vm6, %v1374_v24 }
 0x12c   :  { %1150 = vmatmul.msk.f32.gmra.mxu1 %vm117_vm6, %v1381_v25 }
 0x134   :  { %1151 = vmatmul.msk.f32.gmra.mxu1 %vm117_vm6, %v1388_v26 }
 0x13c   :  { %1152 = vmatmul.msk.f32.gmra.mxu1 %vm117_vm6, %v1395_v27 }
 0x144   :  { %1153 = vmatmul.msk.f32.gmra.mxu1 %vm117_vm6, %v1402_v28 }
 0x14c   :  { %1154 = vmatmul.msk.f32.gmra.mxu1 %vm117_vm6, %v1409_v29 }
 0x154   :  { %1155 = vmatmul.msk.f32.gmra.mxu1 %vm117_vm6, %v1416_v30 }
 0x15c   :  { %1156 = vmatmul.msk.f32.gmra.mxu1 %vm117_vm6, %v1423_v31 }
 0x164   :  { %1157 = vmatmul.msk.f32.gmra.mxu1 %vm117_vm6, %v1430_v32 }
 0x16c   :  { %1158 = vmatmul.msk.f32.gmra.mxu1 %vm117_vm6, %v1437_v33 }
 0x174   :  { %1159 = vmatmul.msk.f32.gmra.mxu1 %vm117_vm6, %v1444_v34 }
 0x17c   :  { %1160 = vmatmul.msk.f32.gmra.mxu1 %vm117_vm6, %v1451_v35 }
 0x184   :  { %1161 = vmatmul.msk.f32.gmra.mxu1 %vm117_vm6, %v1458_v36 }
 0x18c   :  { %1162 = vmatmul.msk.f32.gmra.mxu1 %vm117_vm6, %v1468_v38 }
 0x191   :  { %v207_v40 = vpop.f32.mrf.mxu1 }
 0x194   :  { %1163 = vmatmul.msk.f32.gmra.mxu1 %vm117_vm6, %v1478_v41 }
 0x199   :  { %v210_v42 = vpop.f32.mrf.mxu1 }
 0x19c   :  { %1164 = vmatmul.msk.f32.gmra.mxu1 %vm117_vm6, %v1485_v43 }
 0x1a1   :  { %v213_v44 = vpop.f32.mrf.mxu1 }
 0x1a4   :  { %1165 = vmatmul.msk.f32.gmra.mxu1 %vm117_vm6, %v1492_v45 }
 0x1a9   :  { %v216_v46 = vpop.f32.mrf.mxu1 }
 0x1ac   :  { %1166 = vmatmul.msk.f32.gmra.mxu1 %vm117_vm6, %v1499_v47 }
 0x1b1   :  { %v219_v49 = vpop.f32.mrf.mxu1 }
 0x1b2   :  { %1171 = vmatmul.msk.f32.vlgmr.msrb.gmra.mxu0 %vm281_vm7, %v219_v49 }
 0x1b4   :  { %1167 = vmatmul.msk.f32.gmra.mxu1 %vm117_vm6, %v1509_v50 }
 0x1b9   :  { %v222_v51 = vpop.f32.mrf.mxu1 }
 0x1ba   :  { %1172 = vmatmul.msk.f32.vlgmr.msra.gmra.mxu2 %vm281_vm7, %v222_v51 }
 0x1bb   :  { %392 = vmatpush.msra.mxu2 %v364_v57 }
 0x1bc   :  { %1168 = vmatmul.msk.f32.gmra.mxu1 %vm117_vm6, %v1517_v52 }
 0x1c1   :  { %v225_v53 = vpop.f32.mrf.mxu1 }
 0x1c2   :  { %1173 = vmatmul.msk.f32.gmra.mxu2 %vm281_vm7, %v225_v53 }
 0x1c4   :  { %1169 = vmatmul.msk.f32.gmra.mxu1 %vm117_vm6, %v1525_v54 }
 0x1c9   :  { %v228_v55 = vpop.f32.mrf.mxu1 }
 0x1ca   :  { %1174 = vmatmul.msk.f32.gmra.mxu2 %vm281_vm7, %v228_v55 }
 0x1cc   :  { %1170 = vmatmul.msk.f32.gmra.mxu1 %vm117_vm6, %v1533_v56 }
 0x1d1   :  { %v231_v58 = vpop.f32.mrf.mxu1 }
 0x1d2   :  { %1175 = vmatmul.msk.f32.vlgmr.msrb.gmra.mxu2 %vm281_vm7, %v207_v40 }
 0x1d3   :  { %530 = vmatpush.msrb.mxu2 %v502_v2 }
 0x1d9   :  { %v234_v59 = vpop.f32.mrf.mxu1 }
 0x1da   :  { %1176 = vmatmul.msk.f32.gmra.mxu2 %vm281_vm7, %v210_v42 }
 0x1e1   :  { %v237_v60 = vpop.f32.mrf.mxu1 }
 0x1e2   :  { %1177 = vmatmul.msk.f32.gmra.mxu2 %vm281_vm7, %v213_v44 }
 0x1e9   :  { %v240_v61 = vpop.f32.mrf.mxu1 }
 0x1ea   :  { %1178 = vmatmul.msk.f32.gmra.mxu2 %vm281_vm7, %v216_v46 }
 0x1f1   :  { %v243_v63 = vpop.f32.mrf.mxu1 }
 0x1f2   :  { %1179 = vmatmul.msk.f32.vlgmr.msra.gmra.mxu2 %vm281_vm7, %v231_v58  ;;  %1183 = vmatmul.msk.f32.vlgmr.msrb.gmra.mxu1 %vm281_vm7, %v243_v63 }
 0x1f9   :  { %v246_v0 = vpop.f32.mrf.mxu1 }
 0x1fa   :  { %1180 = vmatmul.msk.f32.gmra.mxu2 %vm281_vm7, %v234_v59  ;;  %1184 = vmatmul.msk.f32.vlgmr.msra.gmra.mxu3 %vm281_vm7, %v246_v0 }
 0x201   :  { %v249_v1 = vpop.f32.mrf.mxu1 }
 0x202   :  { %1181 = vmatmul.msk.f32.gmra.mxu2 %vm281_vm7, %v237_v60  ;;  %1185 = vmatmul.msk.f32.gmra.mxu3 %vm281_vm7, %v249_v1 }
 0x209   :  { %v252_v3 = vpop.f32.mrf.mxu1 }
 0x20a   :  { %1182 = vmatmul.msk.f32.gmra.mxu2 %vm281_vm7, %v240_v61  ;;  %1186 = vmatmul.msk.f32.gmra.mxu3 %vm281_vm7, %v252_v3 }
 0x211   :  { %v255_v4 = vpop.f32.mrf.mxu1 }
 0x212   :  { %1187 = vmatmul.msk.f32.vlgmr.msra.gmra.mxu0 %vm281_vm7, %v255_v4 }
 0x219   :  { %v258_v5 = vpop.f32.mrf.mxu1 }
 0x21a   :  { %1188 = vmatmul.msk.f32.gmra.mxu0 %vm281_vm7, %v258_v5 }
 0x221   :  { %v261_v6 = vpop.f32.mrf.mxu1 }
 0x222   :  { %1189 = vmatmul.msk.f32.gmra.mxu0 %vm281_vm7, %v261_v6 }
 0x229   :  { %v264_v7 = vpop.f32.mrf.mxu1 }
 0x22a   :  { %1190 = vmatmul.msk.f32.gmra.mxu0 %vm281_vm7, %v264_v7 }
 0x22f   :  { %v311_v21 = vpop.f32.mrf.mxu0 }
 0x231   :  { %v267_v8 = vpop.f32.mrf.mxu1 }
 0x232   :  { %1191 = vmatmul.msk.f32.vlgmr.msrb.gmra.mxu2 %vm281_vm7, %v267_v8 }
 0x239   :  { %v270_v9 = vpop.f32.mrf.mxu1 }
 0x23a   :  { %1192 = vmatmul.msk.f32.gmra.mxu2 %vm281_vm7, %v270_v9 }
 0x23d   :  { %v314_v11 = vpop.f32.mrf.mxu2 }
 0x241   :  { %v273_v10 = vpop.f32.mrf.mxu1 }
 0x242   :  { %1193 = vmatmul.msk.f32.gmra.mxu2 %vm281_vm7, %v273_v10 }
 0x245   :  { %v317_v13 = vpop.f32.mrf.mxu2 }
 0x249   :  { %v276_v12 = vpop.f32.mrf.mxu1 }
 0x24a   :  { %1194 = vmatmul.msk.f32.gmra.mxu2 %vm281_vm7, %v276_v12 }
 0x24d   :  { %v320_v14 = vpop.f32.mrf.mxu2 }
 0x255   :  { %v352_v15 = vpop.f32.mrf.mxu2 }
 0x256   :  { %v353_v60 = vadd.f32 %v352_v15, %v311_v21  ;;  %v1263_v15 = vld [vmem:[%s1761_s2 + $0x30] ss:$0 sm:$0xff] }
 0x25d   :  { %v355_v16 = vpop.f32.mrf.mxu2 }
 0x25e   :  { %v356_v55 = vadd.f32 %v355_v16, %v314_v11 }
 0x265   :  { %v358_v17 = vpop.f32.mrf.mxu2 }
 0x266   :  { %v359_v53 = vadd.f32 %v358_v17, %v317_v13 }
 0x26d   :  { %v361_v18 = vpop.f32.mrf.mxu2 }
 0x26e   :  { %v362_v57 = vadd.f32 %v361_v18, %v320_v14 }
 0x26f   :  { %v440_v6 = vpop.f32.mrf.mxu1 }
 0x275   :  { %v394_v19 = vpop.f32.mrf.mxu2 }
 0x276   :  { %v406_v63 = vadd.f32 %v394_v19, %v353_v60  ;;  %v887_v60 = vld [vmem:[%s1761_s2 + $0xf0] sm:$0xff] }
 0x278   :  { %v452_v7 = vadd.f32 %v440_v6, %v406_v63  ;;  %v885_v63 = vld [vmem:[%s1761_s2 + $0xe0] sm:$0xff] }
 0x27d   :  { %v397_v20 = vpop.f32.mrf.mxu2  ;;  %v443_v42 = vpop.f32.mrf.mxu3 }
 0x27e   :  { %v407_v61 = vadd.f32 %v397_v20, %v356_v55  ;;  %v835_v55 = vld [vmem:[%s1761_s2 + $0xb8] sm:$0xff] }
 0x280   :  { %v453_v3 = vadd.f32 %v443_v42, %v407_v61 }
 0x285   :  { %v400_v37 = vpop.f32.mrf.mxu2  ;;  %v446_v49 = vpop.f32.mrf.mxu3 }
 0x286   :  { %v408_v58 = vadd.f32 %v400_v37, %v359_v53  ;;  %v836_v53 = vld [vmem:[%s1761_s2 + $0xc0] sm:$0xff] }
 0x288   :  { %v454_v0 = vadd.f32 %v446_v49, %v408_v58  ;;  %v838_v49 = vld [vmem:[%s1761_s2 + $0xd0] sm:$0xff] }
 0x28d   :  { %v403_v40 = vpop.f32.mrf.mxu2  ;;  %v449_v1 = vpop.f32.mrf.mxu3 }
 0x28e   :  { %v409_v62 = vadd.f32 %v403_v40, %v362_v57 }
 0x28f   :  { %v486_v39 = vpop.f32.mrf.mxu0 }
 0x290   :  { %v455_v4 = vadd.f32 %v449_v1, %v409_v62  ;;  %v498_v11 = vadd.f32 %v486_v39, %v452_v7  ;;  %v886_v62 = vld [vmem:[%s1761_s2 + $0xe8] sm:$0xff] }
 0x297   :  { %v489_v44 = vpop.f32.mrf.mxu0 }
 0x298   :  { %v499_v8 = vadd.f32 %v489_v44, %v453_v3 }
 0x29f   :  { %v492_v51 = vpop.f32.mrf.mxu0 }
 0x2a0   :  { %v500_v5 = vadd.f32 %v492_v51, %v454_v0  ;;  %v837_v51 = vld [vmem:[%s1761_s2 + $0xc8] sm:$0xff]  ;;  %v884_v0 = vld [vmem:[%s1761_s2 + $0xd8] sm:$0xff] }
 0x2a7   :  { %v495_v2 = vpop.f32.mrf.mxu0 }
 0x2a8   :  { %v501_v9 = vadd.f32 %v495_v2, %v455_v4 }
 0x2b5   :  { %v532_v46 = vpop.f32.mrf.mxu2 }
 0x2b6   :  { %v544_v16 = vadd.f32 %v532_v46, %v498_v11 }
 0x2b8   :  { %v550_v37 = vadd.f32 %v1263_v15, %v544_v16 }
 0x2ba   :  { %v554_v42 = vmax.f32 %v550_v37, 0.0  ;;  %v944_v37 = vld [vmem:[%s1761_s2 + $0x108] sm:$0xff] }
 0x2bd   :  { %v535_v48 = vpop.f32.mrf.mxu2 }
 0x2be   :  { %v545_v13 = vadd.f32 %v535_v48, %v499_v8 }
 0x2c0   :  { %v551_v20 = vadd.f32 %v1263_v15, %v545_v13 }
 0x2c2   :  { %v555_v40 = vmax.f32 %v551_v20, 0.0 }
 0x2c5   :  { %v538_v59 = vpop.f32.mrf.mxu2 }
 0x2c6   :  { %v546_v10 = vadd.f32 %v538_v59, %v500_v5 }
 0x2c8   :  { %v552_v18 = vadd.f32 %v1263_v15, %v546_v10 }
 0x2ca   :  { %v556_v21 = vmax.f32 %v552_v18, 0.0  ;;  %v946_v18 = vld [vmem:[%s1761_s2 + $0x118] sm:$0xff] }
 0x2cd   :  { %v541_v12 = vpop.f32.mrf.mxu2 }
 0x2ce   :  { %v547_v14 = vadd.f32 %v541_v12, %v501_v9 }
 0x2d0   :  { %v553_v17 = vadd.f32 %v1263_v15, %v547_v14 }
 0x2d2   :  { %v557_v19 = vmax.f32 %v553_v17, 0.0 }
 0x2d4   :  { %570 = vmatpush.msrb.mxu3 %v557_v19 }
 0x2d6   :  { %571 = vmatpush.msrb.mxu3 %v556_v21  ;;  %v945_v21 = vld [vmem:[%s1761_s2 + $0x110] sm:$0xff] }
 0x2d8   :  { %572 = vmatpush.msrb.mxu3 %v555_v40 }
 0x2da   :  { %573 = vmatpush.msrb.mxu3 %v554_v42 }
 0x2db   :  { %1195 = vmatmul.msk.f32.vlgmr.msrb.gmra.mxu3 %vm117_vm6, %v1360_v22  ;;  %v650_v22 = vld [vmem:[%s1761_s2 + $0x50] sm:$0xff] }
 0x2dc   :  { %720 = vmatpush.msra.mxu2 %v650_v22  ;;  %v943_v22 = vld [vmem:[%s1761_s2 + $0x100] sm:$0xff] }
 0x2e3   :  { %1196 = vmatmul.msk.f32.gmra.mxu3 %vm117_vm6, %v1367_v23  ;;  %v649_v23 = vld [vmem:[%s1761_s2 + $0x48] sm:$0xff] }
 0x2e4   :  { %721 = vmatpush.msra.mxu2 %v649_v23 }
 0x2eb   :  { %1197 = vmatmul.msk.f32.gmra.mxu3 %vm117_vm6, %v1374_v24  ;;  %v648_v24 = vld [vmem:[%s1761_s2 + $0x40] sm:$0xff] }
 0x2ec   :  { %722 = vmatpush.msra.mxu2 %v648_v24 }
 0x2f3   :  { %1198 = vmatmul.msk.f32.gmra.mxu3 %vm117_vm6, %v1381_v25  ;;  %v647_v25 = vld [vmem:[%s1761_s2 + $0x38] sm:$0xff] }
 0x2f4   :  { %723 = vmatpush.msra.mxu2 %v647_v25 }
 0x2fb   :  { %1199 = vmatmul.msk.f32.gmra.mxu3 %vm117_vm6, %v1388_v26  ;;  %v654_v26 = vld [vmem:[%s1761_s2 + $0x70] sm:$0xff] }
 0x2fc   :  { %679 = vmatpush.msrb.mxu0 %v654_v26 }
 0x303   :  { %1200 = vmatmul.msk.f32.gmra.mxu3 %vm117_vm6, %v1395_v27  ;;  %v653_v27 = vld [vmem:[%s1761_s2 + $0x68] sm:$0xff] }
 0x304   :  { %680 = vmatpush.msrb.mxu0 %v653_v27 }
 0x30b   :  { %1201 = vmatmul.msk.f32.gmra.mxu3 %vm117_vm6, %v1402_v28  ;;  %v652_v28 = vld [vmem:[%s1761_s2 + $0x60] sm:$0xff] }
 0x30c   :  { %681 = vmatpush.msrb.mxu0 %v652_v28 }
 0x313   :  { %1202 = vmatmul.msk.f32.gmra.mxu3 %vm117_vm6, %v1409_v29  ;;  %v651_v29 = vld [vmem:[%s1761_s2 + $0x58] sm:$0xff] }
 0x314   :  { %682 = vmatpush.msrb.mxu0 %v651_v29 }
 0x31b   :  { %1203 = vmatmul.msk.f32.gmra.mxu3 %vm117_vm6, %v1416_v30 }
 0x323   :  { %1204 = vmatmul.msk.f32.gmra.mxu3 %vm117_vm6, %v1423_v31 }
 0x32b   :  { %1205 = vmatmul.msk.f32.gmra.mxu3 %vm117_vm6, %v1430_v32 }
 0x333   :  { %1206 = vmatmul.msk.f32.gmra.mxu3 %vm117_vm6, %v1437_v33 }
 0x33b   :  { %1207 = vmatmul.msk.f32.gmra.mxu3 %vm117_vm6, %v1444_v34  ;;  %v740_v34 = vld [vmem:[%s1761_s2 + $0x90] sm:$0xff] }
 0x33c   :  { %765 = vmatpush.msra.mxu0 %v740_v34 }
 0x343   :  { %1208 = vmatmul.msk.f32.gmra.mxu3 %vm117_vm6, %v1451_v35  ;;  %v739_v35 = vld [vmem:[%s1761_s2 + $0x88] sm:$0xff] }
 0x344   :  { %766 = vmatpush.msra.mxu0 %v739_v35 }
 0x34b   :  { %1209 = vmatmul.msk.f32.gmra.mxu3 %vm117_vm6, %v1458_v36  ;;  %v738_v36 = vld [vmem:[%s1761_s2 + $0x80] sm:$0xff] }
 0x34c   :  { %767 = vmatpush.msra.mxu0 %v738_v36 }
 0x353   :  { %1210 = vmatmul.msk.f32.gmra.mxu3 %vm117_vm6, %v1468_v38  ;;  %v737_v38 = vld [vmem:[%s1761_s2 + $0x78] sm:$0xff] }
 0x354   :  { %768 = vmatpush.msra.mxu0 %v737_v38 }
 0x35b   :  { %1211 = vmatmul.msk.f32.gmra.mxu3 %vm117_vm6, %v1478_v41 }
 0x35e   :  { %v575_v30 = vpop.f32.mrf.mxu3 }
 0x35f   :  { %1223 = vmatmul.msk.f32.vlgmr.msra.gmra.mxu2 %vm117_vm6, %v575_v30 }
 0x363   :  { %1212 = vmatmul.msk.f32.gmra.mxu3 %vm117_vm6, %v1485_v43 }
 0x366   :  { %v578_v31 = vpop.f32.mrf.mxu3 }
 0x367   :  { %1224 = vmatmul.msk.f32.gmra.mxu2 %vm117_vm6, %v578_v31  ;;  %v1264_v31 = vld [vmem:[%s1761_s2 + $0xf8] ss:$0 sm:$0xff] }
 0x36b   :  { %1213 = vmatmul.msk.f32.gmra.mxu3 %vm117_vm6, %v1492_v45 }
 0x36e   :  { %v581_v32 = vpop.f32.mrf.mxu3 }
 0x36f   :  { %1225 = vmatmul.msk.f32.gmra.mxu2 %vm117_vm6, %v581_v32 }
 0x373   :  { %1214 = vmatmul.msk.f32.gmra.mxu3 %vm117_vm6, %v1499_v47 }
 0x376   :  { %v584_v33 = vpop.f32.mrf.mxu3 }
 0x377   :  { %1226 = vmatmul.msk.f32.gmra.mxu2 %vm117_vm6, %v584_v33 }
 0x37b   :  { %1215 = vmatmul.msk.f32.gmra.mxu3 %vm117_vm6, %v1509_v50  ;;  %v789_v50 = vld [vmem:[%s1761_s2 + $0xb0] sm:$0xff] }
 0x37c   :  { %814 = vmatpush.msrb.mxu2 %v789_v50 }
 0x37e   :  { %v587_v41 = vpop.f32.mrf.mxu3 }
 0x37f   :  { %1219 = vmatmul.msk.f32.vlgmr.msrb.gmra.mxu0 %vm117_vm6, %v587_v41 }
 0x380   :  { %863 = vmatpush.msrb.mxu0 %v838_v49 }
 0x382   :  { %864 = vmatpush.msrb.mxu0 %v837_v51 }
 0x383   :  { %1216 = vmatmul.msk.f32.gmra.mxu3 %vm117_vm6, %v1517_v52  ;;  %v788_v52 = vld [vmem:[%s1761_s2 + $0xa8] sm:$0xff] }
 0x384   :  { %815 = vmatpush.msrb.mxu2 %v788_v52  ;;  %865 = vmatpush.msrb.mxu0 %v836_v53 }
 0x386   :  { %v590_v43 = vpop.f32.mrf.mxu3  ;;  %866 = vmatpush.msrb.mxu0 %v835_v55 }
 0x387   :  { %1220 = vmatmul.msk.f32.gmra.mxu0 %vm117_vm6, %v590_v43 }
 0x38b   :  { %1217 = vmatmul.msk.f32.gmra.mxu3 %vm117_vm6, %v1525_v54  ;;  %v787_v54 = vld [vmem:[%s1761_s2 + $0xa0] sm:$0xff] }
 0x38c   :  { %816 = vmatpush.msrb.mxu2 %v787_v54 }
 0x38e   :  { %v593_v45 = vpop.f32.mrf.mxu3 }
 0x38f   :  { %1221 = vmatmul.msk.f32.gmra.mxu0 %vm117_vm6, %v593_v45 }
 0x393   :  { %1218 = vmatmul.msk.f32.gmra.mxu3 %vm117_vm6, %v1533_v56  ;;  %v786_v56 = vld [vmem:[%s1761_s2 + $0x98] sm:$0xff] }
 0x394   :  { %817 = vmatpush.msrb.mxu2 %v786_v56 }
 0x396   :  { %v596_v47 = vpop.f32.mrf.mxu3  ;;  %912 = vmatpush.msra.mxu2 %v887_v60 }
 0x397   :  { %1222 = vmatmul.msk.f32.gmra.mxu0 %vm117_vm6, %v596_v47 }
 0x398   :  { %913 = vmatpush.msra.mxu2 %v886_v62 }
 0x39a   :  { %914 = vmatpush.msra.mxu2 %v885_v63 }
 0x39c   :  { %915 = vmatpush.msra.mxu2 %v884_v0 }
 0x39e   :  { %v599_v39 = vpop.f32.mrf.mxu3 }
 0x39f   :  { %1227 = vmatmul.msk.f32.vlgmr.msra.gmra.mxu0 %vm117_vm6, %v599_v39 }
 0x3a0   :  { %973 = vmatpush.msra.mxu0 %v946_v18 }
 0x3a2   :  { %974 = vmatpush.msra.mxu0 %v945_v21 }
 0x3a4   :  { %975 = vmatpush.msra.mxu0 %v944_v37 }
 0x3a6   :  { %v602_v44 = vpop.f32.mrf.mxu3  ;;  %976 = vmatpush.msra.mxu0 %v943_v22 }
 0x3a7   :  { %1228 = vmatmul.msk.f32.gmra.mxu0 %vm117_vm6, %v602_v44 }
 0x3ae   :  { %v605_v46 = vpop.f32.mrf.mxu3 }
 0x3af   :  { %1229 = vmatmul.msk.f32.gmra.mxu0 %vm117_vm6, %v605_v46 }
 0x3b6   :  { %v608_v48 = vpop.f32.mrf.mxu3 }
 0x3b7   :  { %1230 = vmatmul.msk.f32.gmra.mxu0 %vm117_vm6, %v608_v48 }
 0x3be   :  { %v611_v57 = vpop.f32.mrf.mxu3 }
 0x3bf   :  { %1231 = vmatmul.msk.f32.vlgmr.msrb.gmra.mxu2 %vm117_vm6, %v611_v57 }
 0x3c6   :  { %v614_v58 = vpop.f32.mrf.mxu3 }
 0x3c7   :  { %1232 = vmatmul.msk.f32.gmra.mxu2 %vm117_vm6, %v614_v58 }
 0x3ce   :  { %v617_v59 = vpop.f32.mrf.mxu3 }
 0x3cf   :  { %1233 = vmatmul.msk.f32.gmra.mxu2 %vm117_vm6, %v617_v59 }
 0x3d6   :  { %v620_v61 = vpop.f32.mrf.mxu3 }
 0x3d7   :  { %1234 = vmatmul.msk.f32.gmra.mxu2 %vm117_vm6, %v620_v61 }
 0x3de   :  { %v623_v1 = vpop.f32.mrf.mxu3 }
 0x3df   :  { %1235 = vmatmul.msk.f32.vlgmr.msrb.gmra.mxu0 %vm117_vm6, %v623_v1 }
 0x3e2   :  { %v725_v12 = vpop.f32.mrf.mxu2 }
 0x3e6   :  { %v626_v2 = vpop.f32.mrf.mxu3 }
 0x3e7   :  { %1236 = vmatmul.msk.f32.gmra.mxu0 %vm117_vm6, %v626_v2  ;;  %v1265_v2 = vld [vmem:[%s1761_s2 + $0x120] ss:$0 sm:$0xff]  ;;  %s1314_s2 = smov [#allocation2]  }
 0x3e8   :  { %s1127_s30 = sshll.u32 %s1314_s2, 4  ;;  %s1128_s30 = int_to_ptr.vmem [resolvable:$true] %s1127_s30 }
 0x3ea   :  { %v728_v13 = vpop.f32.mrf.mxu2 }
 0x3ee   :  { %v629_v3 = vpop.f32.mrf.mxu3 }
 0x3ef   :  { %1237 = vmatmul.msk.f32.gmra.mxu0 %vm117_vm6, %v629_v3  ;;  %v1312_v3 = vmov 4  }
 0x3f0   :  { %1260 = vset.pattern.permute.xlu2 %v1312_v3  ;;  %1261 = vset.pattern.permute.xlu0 %v1312_v3 }
 0x3f1   :  { %1262 = vset.pattern.permute.xlu1 %v1312_v3 }
 0x3f2   :  { %v731_v15 = vpop.f32.mrf.mxu2 }
 0x3f6   :  { %v632_v4 = vpop.f32.mrf.mxu3 }
 0x3f7   :  { %1238 = vmatmul.msk.f32.gmra.mxu0 %vm117_vm6, %v632_v4 }
 0x3fa   :  { %v734_v17 = vpop.f32.mrf.mxu2 }
 0x3fc   :  { %v684_v9 = vpop.f32.mrf.mxu0 }
 0x3fd   :  { %v726_v27 = vadd.f32 %v725_v12, %v684_v9 }
 0x3fe   :  { %v635_v5 = vpop.f32.mrf.mxu3 }
 0x3ff   :  { %1239 = vmatmul.msk.f32.vlgmr.msra.gmra.mxu2 %vm117_vm6, %v635_v5 }
 0x404   :  { %v687_v10 = vpop.f32.mrf.mxu0 }
 0x405   :  { %v729_v34 = vadd.f32 %v728_v13, %v687_v10 }
 0x406   :  { %v638_v6 = vpop.f32.mrf.mxu3 }
 0x407   :  { %1240 = vmatmul.msk.f32.gmra.mxu2 %vm117_vm6, %v638_v6 }
 0x40c   :  { %v690_v11 = vpop.f32.mrf.mxu0 }
 0x40d   :  { %v732_v50 = vadd.f32 %v731_v15, %v690_v11 }
 0x40e   :  { %v641_v7 = vpop.f32.mrf.mxu3 }
 0x40f   :  { %1241 = vmatmul.msk.f32.gmra.mxu2 %vm117_vm6, %v641_v7 }
 0x414   :  { %v693_v14 = vpop.f32.mrf.mxu0 }
 0x415   :  { %v735_v51 = vadd.f32 %v734_v17, %v693_v14 }
 0x416   :  { %v644_v8 = vpop.f32.mrf.mxu3 }
 0x417   :  { %1242 = vmatmul.msk.f32.gmra.mxu2 %vm117_vm6, %v644_v8 }
 0x41c   :  { %v770_v16 = vpop.f32.mrf.mxu0 }
 0x41d   :  { %v782_v28 = vadd.f32 %v770_v16, %v726_v27 }
 0x424   :  { %v773_v19 = vpop.f32.mrf.mxu0 }
 0x425   :  { %v783_v36 = vadd.f32 %v773_v19, %v729_v34 }
 0x42c   :  { %v776_v40 = vpop.f32.mrf.mxu0 }
 0x42d   :  { %v784_v56 = vadd.f32 %v776_v40, %v732_v50 }
 0x434   :  { %v779_v23 = vpop.f32.mrf.mxu0 }
 0x435   :  { %v785_v55 = vadd.f32 %v779_v23, %v735_v51 }
 0x442   :  { %v819_v20 = vpop.f32.mrf.mxu2 }
 0x443   :  { %v831_v29 = vadd.f32 %v819_v20, %v782_v28 }
 0x44a   :  { %v822_v42 = vpop.f32.mrf.mxu2 }
 0x44b   :  { %v832_v41 = vadd.f32 %v822_v42, %v783_v36 }
 0x452   :  { %v825_v24 = vpop.f32.mrf.mxu2 }
 0x453   :  { %v833_v44 = vadd.f32 %v825_v24, %v784_v56 }
 0x45a   :  { %v828_v26 = vpop.f32.mrf.mxu2 }
 0x45b   :  { %v834_v59 = vadd.f32 %v828_v26, %v785_v55 }
 0x45c   :  { %v868_v25 = vpop.f32.mrf.mxu0 }
 0x45d   :  { %v880_v30 = vadd.f32 %v868_v25, %v831_v29 }
 0x464   :  { %v871_v32 = vpop.f32.mrf.mxu0 }
 0x465   :  { %v881_v45 = vadd.f32 %v871_v32, %v832_v41 }
 0x46c   :  { %v874_v54 = vpop.f32.mrf.mxu0 }
 0x46d   :  { %v882_v48 = vadd.f32 %v874_v54, %v833_v44 }
 0x474   :  { %v877_v58 = vpop.f32.mrf.mxu0 }
 0x475   :  { %v883_v61 = vadd.f32 %v877_v58, %v834_v59 }
 0x482   :  { %v917_v33 = vpop.f32.mrf.mxu2 }
 0x483   :  { %v929_v35 = vadd.f32 %v917_v33, %v880_v30 }
 0x485   :  { %v935_v38 = vadd.f32 %v1264_v31, %v929_v35 }
 0x487   :  { %v939_v43 = vmax.f32 %v935_v38, 0.0 }
 0x489   :  { %1243 = vmatmul.msk.f32.vlgmr.msra.gmra.mxu0 %vm117_vm6, %v939_v43 }
 0x48a   :  { %v920_v47 = vpop.f32.mrf.mxu2 }
 0x48b   :  { %v930_v52 = vadd.f32 %v920_v47, %v881_v45 }
 0x48d   :  { %v936_v39 = vadd.f32 %v1264_v31, %v930_v52 }
 0x48f   :  { %v940_v46 = vmax.f32 %v936_v39, 0.0 }
 0x491   :  { %1244 = vmatmul.msk.f32.gmra.mxu0 %vm117_vm6, %v940_v46 }
 0x492   :  { %v923_v49 = vpop.f32.mrf.mxu2 }
 0x493   :  { %v931_v53 = vadd.f32 %v923_v49, %v882_v48 }
 0x495   :  { %v937_v57 = vadd.f32 %v1264_v31, %v931_v53 }
 0x497   :  { %v941_v60 = vmax.f32 %v937_v57, 0.0 }
 0x499   :  { %1245 = vmatmul.msk.f32.gmra.mxu0 %vm117_vm6, %v941_v60 }
 0x49a   :  { %v926_v62 = vpop.f32.mrf.mxu2 }
 0x49b   :  { %v932_v63 = vadd.f32 %v926_v62, %v883_v61 }
 0x49d   :  { %v938_v0 = vadd.f32 %v1264_v31, %v932_v63 }
 0x49f   :  { %v942_v1 = vmax.f32 %v938_v0, 0.0 }
 0x4a1   :  { %1246 = vmatmul.msk.f32.gmra.mxu0 %vm117_vm6, %v942_v1 }
 0x506   :  { %v978_v4 = vpop.f32.mrf.mxu0 }
 0x507   :  { %v1736_v5 = vadd.f32 %v1265_v2, %v978_v4 }
 0x509   :  { %v1247_v6 = vmul.f32 -1.442695, %v1736_v5 }
 0x50b   :  { %1266 = vpow2.f32 %v1247_v6 }
 0x50e   :  { %v981_v7 = vpop.f32.mrf.mxu0 }
 0x50f   :  { %v1739_v8 = vadd.f32 %v1265_v2, %v981_v7 }
 0x511   :  { %v1267_v9 = vpop.eup %1266  ;;  %v1248_v10 = vmul.f32 -1.442695, %v1739_v8 }
 0x512   :  { %v1002_v12 = vadd.f32 1.0, %v1267_v9  ;;  %v1313_v9 = vmov 16.0  }
 0x513   :  { %1268 = vpow2.f32 %v1248_v10 }
 0x514   :  { %1270 = vrcp.f32 %v1002_v12  ;;  %v1017_v21 = vand.u32 2147483648, %v1002_v12  ;;  %v1015_v42 = vand.u32 2147483647, %v1002_v12  ;;  %vm1011_vm9 = vweird.f32 %v1002_v12 }
 0x516   :  { %v984_v11 = vpop.f32.mrf.mxu0  ;;  %v1018_v27 = vor.u32 1.1754944e-38, %v1017_v21  ;;  %vm1016_vm11 = vcmp.eq.f32.partialorder %v1015_v42, 8.507059e+37 }
 0x517   :  { %v1742_v13 = vadd.f32 %v1265_v2, %v984_v11 }
 0x519   :  { %v1269_v14 = vpop.eup %1268  ;;  %v1249_v15 = vmul.f32 -1.442695, %v1742_v13 }
 0x51a   :  { %v1271_v16 = vpop.eup %1270  ;;  %v1003_v17 = vadd.f32 1.0, %v1269_v14 }
 0x51b   :  { %1272 = vpow2.f32 %v1249_v15  ;;  %v1007_v18 = vmul.f32 %v1271_v16, %v1002_v12  ;;  %vm1012_vm8 = vweird.f32 %v1271_v16 }
 0x51c   :  { %1274 = vrcp.f32 %v1003_v17  ;;  %vm1013_vm10 = vmor %vm1011_vm9, %vm1012_vm8  ;;  %v1032_v32 = vand.u32 2147483648, %v1003_v17  ;;  %v1030_v34 = vand.u32 2147483647, %v1003_v17  ;;  %vm1026_vm13 = vweird.f32 %v1003_v17 }
 0x51d   :  { %v1008_v19 = vsub.f32 1.0, %v1007_v18  ;;  %vm1090_vm8 = vcmask 31744  }
 0x51e   :  { %v987_v20 = vpop.f32.mrf.mxu0  ;;  %v1033_v43 = vor.u32 1.1754944e-38, %v1032_v32  ;;  %vm1031_vm15 = vcmp.eq.f32.partialorder %v1030_v34, 8.507059e+37 }
 0x51f   :  { %v1745_v37 = vadd.f32 %v1265_v2, %v987_v20  ;;  %v1009_v40 = vmul.f32 %v1271_v16, %v1008_v19 }
 0x521   :  { %v1273_v22 = vpop.eup %1272  ;;  %v1250_v23 = vmul.f32 -1.442695, %v1745_v37  ;;  %v1010_v24 = vadd.f32 %v1271_v16, %v1009_v40 }
 0x522   :  { %v1275_v25 = vpop.eup %1274  ;;  %v1004_v26 = vadd.f32 1.0, %v1273_v22 }
 0x523   :  { %1276 = vpow2.f32 %v1250_v23  ;;  %v1014_v28 = vsel %vm1013_vm10, %v1271_v16, %v1010_v24  ;;  %v1022_v29 = vmul.f32 %v1275_v25, %v1003_v17  ;;  %vm1027_vm12 = vweird.f32 %v1275_v25 }
 0x524   :  { %1278 = vrcp.f32 %v1004_v26  ;;  %v1019_v30 = vsel %vm1016_vm11, %v1018_v27, %v1014_v28  ;;  %vm1028_vm14 = vmor %vm1026_vm13, %vm1027_vm12  ;;  %v1047_v54 = vand.u32 2147483648, %v1004_v26  ;;  %v1045_v39 = vand.u32 2147483647, %v1004_v26 }
 0x525   :  { %1068 = vperm.xlu2 %1260, %v1019_v30   ;;  %v1023_v31 = vsub.f32 1.0, %v1022_v29  ;;  %vm1041_vm1 = vweird.f32 %v1004_v26  ;;  %vm1118_vm10 = vcmask 1040384   ;;  %vm1120_vm11 = vcmask 25600  }
 0x526   :  { %v1048_v48 = vor.u32 1.1754944e-38, %v1047_v54  ;;  %vm1046_vm3 = vcmp.eq.f32.partialorder %v1045_v39, 8.507059e+37 }
 0x527   :  { %v1024_v33 = vmul.f32 %v1275_v25, %v1023_v31 }
 0x529   :  { %v1277_v35 = vpop.eup %1276  ;;  %v1025_v36 = vadd.f32 %v1275_v25, %v1024_v33 }
 0x52a   :  { %v1279_v38 = vpop.eup %1278  ;;  %v1005_v41 = vadd.f32 1.0, %v1277_v35 }
 0x52b   :  { %v1029_v45 = vsel %vm1028_vm14, %v1275_v25, %v1025_v36  ;;  %v1037_v47 = vmul.f32 %v1279_v38, %v1004_v26  ;;  %vm1042_vm0 = vweird.f32 %v1279_v38 }
 0x52c   :  { %1280 = vrcp.f32 %v1005_v41  ;;  %v1034_v50 = vsel %vm1031_vm15, %v1033_v43, %v1029_v45  ;;  %vm1043_vm2 = vmor %vm1041_vm1, %vm1042_vm0  ;;  %v1062_v57 = vand.u32 2147483648, %v1005_v41  ;;  %v1060_v59 = vand.u32 2147483647, %v1005_v41 }
 0x52d   :  { %1073 = vperm.xlu2 %1260, %v1034_v50   ;;  %v1038_v52 = vsub.f32 1.0, %v1037_v47  ;;  %vm1056_vm5 = vweird.f32 %v1005_v41  ;;  %1282 = vrcp.f32 %v1313_v9 }
 0x52e   :  { %v1063_v61 = vor.u32 1.1754944e-38, %v1062_v57  ;;  %vm1061_vm7 = vcmp.eq.f32.partialorder %v1060_v59, 8.507059e+37 }
 0x52f   :  { %v1039_v56 = vmul.f32 %v1279_v38, %v1038_v52 }
 0x531   :  { %v1040_v44 = vadd.f32 %v1279_v38, %v1039_v56 }
 0x532   :  { %v1281_v46 = vpop.eup %1280 }
 0x533   :  { %v1044_v49 = vsel %vm1043_vm2, %v1279_v38, %v1040_v44  ;;  %v1052_v51 = vmul.f32 %v1281_v46, %v1005_v41  ;;  %vm1057_vm4 = vweird.f32 %v1281_v46  ;;  %v1283_v12 = vpop.eup %1282 }
 0x534   :  { %v1049_v53 = vsel %vm1046_vm3, %v1048_v48, %v1044_v49  ;;  %vm1058_vm6 = vmor %vm1056_vm5, %vm1057_vm4  ;;  %v1101_v16 = vmul.f32 16.0, %v1283_v12  ;;  %vm1105_vm9 = vweird.f32 %v1283_v12 }
 0x535   :  { %1078 = vperm.xlu0 %1261, %v1049_v53   ;;  %v1053_v55 = vsub.f32 1.0, %v1052_v51 }
 0x536   :  { %v1102_v20 = vsub.f32 1.0, %v1101_v16 }
 0x537   :  { %v1054_v58 = vmul.f32 %v1281_v46, %v1053_v55 }
 0x538   :  { %v1103_v22 = vmul.f32 %v1283_v12, %v1102_v20 }
 0x539   :  { %v1055_v60 = vadd.f32 %v1281_v46, %v1054_v58 }
 0x53a   :  { %v1104_v26 = vadd.f32 %v1283_v12, %v1103_v22 }
 0x53b   :  { %v1059_v62 = vsel %vm1058_vm6, %v1281_v46, %v1055_v60 }
 0x53c   :  { %v1064_v63 = vsel %vm1061_vm7, %v1063_v61, %v1059_v62  ;;  %v1106_v29 = vsel %vm1105_vm9, %v1283_v12, %v1104_v26 }
 0x53d   :  { %1083 = vperm.xlu1 %1262, %v1064_v63  }
 0x57f   :  { %v1069_v0 = vpop.permute.xlu2 %1068 }
 0x580   :  { %v1086_v3 = vmul.f32 %v1069_v0, %v1736_v5 }
 0x582   :  { %v1091_v6 = vsel %vm1090_vm8, %v1086_v3, 0.0 }
 0x587   :  { %v1074_v1 = vpop.permute.xlu2 %1073 }
 0x588   :  { %v1087_v2 = vmul.f32 %v1074_v1, %v1739_v8 }
 0x58a   :  { %v1092_v4 = vsel %vm1090_vm8, %v1087_v2, 0.0 }
 0x58b   :  { %v1093_v7 = vadd.f32 %v1092_v4, %v1091_v6 }
 0x58d   :  { %v1094_v10 = vrot.slane %v1093_v7, 4 }
 0x58f   :  { %v1095_v14 = vadd.f32 %v1094_v10, %v1093_v7 }
 0x591   :  { %v1096_v18 = vrot.slane %v1095_v14, 2 }
 0x593   :  { %v1097_v40 = vadd.f32 %v1096_v18, %v1095_v14 }
 0x595   :  { %v1098_v24 = vrot.slane %v1097_v40, 1 }
 0x5a7   :  { %v1079_v11 = vpop.permute.xlu0 %1078 }
 0x5a8   :  { %v1088_v15 = vmul.f32 %v1079_v11, %v1742_v13  ;;  %v1099_v13 = vadd.f32 %v1098_v24, %v1097_v40 }
 0x5aa   :  { %v1108_v5 = vsel %vm1090_vm8, %v1088_v15, 0.0  ;;  %v1107_v30 = vmul.f32 %v1106_v29, %v1099_v13 }
 0x5af   :  { %v1084_v17 = vpop.permute.xlu1 %1083 }
 0x5b0   :  { %v1089_v8 = vmul.f32 %v1084_v17, %v1745_v37 }
 0x5b2   :  { %v1109_v19 = vsel %vm1090_vm8, %v1089_v8, 0.0 }
 0x5b3   :  { %v1110_v21 = vadd.f32 %v1109_v19, %v1108_v5 }
 0x5b5   :  { %v1111_v42 = vrot.slane %v1110_v21, 4 }
 0x5b7   :  { %v1112_v23 = vadd.f32 %v1111_v42, %v1110_v21 }
 0x5b9   :  { %v1113_v25 = vrot.slane %v1112_v23, 2 }
 0x5bb   :  { %v1114_v27 = vadd.f32 %v1113_v25, %v1112_v23 }
 0x5bd   :  { %v1115_v28 = vrot.slane %v1114_v27, 1 }
 0x5bf   :  { %v1116_v37 = vadd.f32 %v1115_v28, %v1114_v27 }
 0x5c1   :  { %v1117_v31 = vmul.f32 %v1116_v37, %v1106_v29 }
 0x5c3   :  { %v1119_v32 = vsel %vm1118_vm10, %v1107_v30, %v1117_v31 }
 0x5c4   :  { %1121 = vst.msk [vmem:[#allocation2] sm:$0x3] %vm1120_vm11, %v1119_v32 }
 0x5c5   :  { %1132 = dma.vmem_to_hbm [thread:$0]  %s1128_s30, 32, %s1130_s6, [#allocation3]  }
 0x5c6   :  { %1308 = dma.done.wait [#allocation3], 32  }
 0x5c7   :  { %1309 = vsyncadd [#allocation3], 4294967264 }
 0x5c8   :  { %1137 = vsyncpa [#allocation3], 1 }

</bundles_post_ra>
